<compile_context>
chip_gen: v5e
topology: v5e:2x2
jax: 0.10.0
libtpu: 0.0.40
codegen_flags: <defaults>
</compile_context>

<pallas_src>
import jax
import jax.numpy as jnp
from jax.experimental import pallas as pl
from jax.experimental.pallas import tpu as pltpu
from typing import NamedTuple, List, Tuple


class Instruction(NamedTuple):
    i_in: int
    i_out: int
    path_shape: tuple
    path_weight: float


# ----------------------------------------------------------------------------- #
# irreps helpers: an "irreps" is a list of (mul, ir_dim); ir_dim = 2l+1,
# ir_dim == 1 is the scalar (0e) irrep (the only one allowed to carry a bias).
# ----------------------------------------------------------------------------- #
def irreps_dim(irreps) -> int:
    return sum(mul * d for mul, d in irreps)


def irreps_offsets(irreps) -> List[int]:
    offs, acc = [], 0
    for mul, d in irreps:
        offs.append(acc)
        acc += mul * d
    return offs


def build_instructions(irreps_in, irreps_out, biases) -> List[Instruction]:
    pairs = [(i_in, i_out)
             for i_in, (_, d_in) in enumerate(irreps_in)
             for i_out, (_, d_out) in enumerate(irreps_out)
             if d_in == d_out]
    ins = [Instruction(i_in, i_out, (irreps_in[i_in][0], irreps_out[i_out][0]), 1.0)
           for i_in, i_out in pairs]

    # path_normalization='element'
    def alpha(instr):
        x = sum(irreps_in[j.i_in][0] for j in ins if j.i_out == instr.i_out)
        return 1.0 if x == 0 else float(x)

    ins = [Instruction(i.i_in, i.i_out, i.path_shape, alpha(i) ** (-0.5)) for i in ins]

    # bias instructions only on scalar output irreps
    ins += [Instruction(-1, i_out, (mul * d,), 1.0)
            for i_out, (b, (mul, d)) in enumerate(zip(biases, irreps_out))
            if b and d == 1]
    return ins


def count_params(irreps_in, irreps_out, instructions) -> Tuple[int, int]:
    weight_numel = sum(s[0] * s[1] for i in instructions if i.i_in != -1 for s in [i.path_shape])
    bias_numel = sum(irreps_out[i.i_out][0] * irreps_out[i.i_out][1]
                     for i in instructions if i.i_in == -1)
    return weight_numel, bias_numel


# ----------------------------------------------------------------------------- #
# Parameter expansion (plain JAX glue): expand flat e3nn weights/biases into a
# single (Din, Dout) matrix W_big and a (Dout,) bias b_big such that
#     out = x @ W_big + b_big
# exactly reproduces the per-instruction einsum/sum/concat semantics.
# ----------------------------------------------------------------------------- #
def expand_params(irreps_in, irreps_out, instructions, flat_w, flat_b, dtype=jnp.float32):
    din, dout = irreps_dim(irreps_in), irreps_dim(irreps_out)
    in_off, out_off = irreps_offsets(irreps_in), irreps_offsets(irreps_out)
    W = jnp.zeros((din, dout), dtype)
    b = jnp.zeros((dout,), dtype)
    wi = bi = 0
    for ins in instructions:
        mul_out, d_out = irreps_out[ins.i_out]
        if ins.i_in == -1:
            n = mul_out * d_out
            b = b.at[out_off[ins.i_out]:out_off[ins.i_out] + n].add(
                ins.path_weight * flat_b[bi:bi + n])
            bi += n
        else:
            mul_in, d_in = irreps_in[ins.i_in]
            n = mul_in * mul_out
            w = ins.path_weight * flat_w[wi:wi + n].reshape(mul_in, mul_out)
            wi += n
            # in index  = start_in  + u*d_in + i
            # out index = start_out + v*d_in + i   (i.e. kron(w, eye(ir_dim)))
            block = jnp.einsum('uv,ij->uivj', w, jnp.eye(d_in, dtype=dtype))
            block = block.reshape(mul_in * d_in, mul_out * d_out)
            W = W.at[in_off[ins.i_in]:in_off[ins.i_in] + mul_in * d_in,
                     out_off[ins.i_out]:out_off[ins.i_out] + mul_out * d_out].add(block)
    return W, b


# ----------------------------------------------------------------------------- #
# Tile planning / VMEM budgeting helpers
# ----------------------------------------------------------------------------- #
def _round_up(x: int, m: int) -> int:
    return (x + m - 1) // m * m


def _cdiv(a: int, b: int) -> int:
    return -(-a // b)


def _vmem_budget_bytes() -> int:
    """~75% of per-core VMEM; conservative (v7x) fallback if the query fails."""
    physical = 64 << 20
    try:
        info = pltpu.get_tpu_info()
        physical = int(getattr(info, "vmem_capacity_bytes", physical))
    except Exception:
        pass
    return int(physical * 0.75)


def _pick_tile(dim: int, cap: int) -> int:
    """Multiple of 128, <= cap, not larger than the 128-padded dim."""
    cap = max(128, (cap // 128) * 128)
    return min(cap, _round_up(dim, 128))


def _balanced_tb(B: int, cap: int, multiple: int) -> int:
    """Batch tile: roughly B/n_tiles rounded to `multiple`, so padding waste is small."""
    cap = max(multiple, (cap // multiple) * multiple)
    n_tiles = max(1, _cdiv(B, cap))
    return min(cap, _round_up(_cdiv(B, n_tiles), multiple))


class LinearParams(NamedTuple):
    Wp: jnp.ndarray      # (din_p, dout_p), compute dtype (bf16), padded once at prepare
    bp: jnp.ndarray      # (1, dout_p), float32
    din: int
    dout: int
    din_p: int
    dout_p: int
    tk: int              # K tile (== din_p on the resident path)
    tn: int              # N tile (== dout_p on the resident path)
    resident: bool       # whole-W-in-VMEM fast path


def prepare_linear_params(irreps_in, irreps_out, instructions, flat_w, flat_b,
                          compute_dtype=jnp.bfloat16, tn_cap=512, tk_cap=512):
    """One-time setup: expand, pad to lane-dense multiples of 128 (or of the chosen
    tile on the fallback path), and cast the weight to the compute dtype."""
    W_big, b_big = expand_params(irreps_in, irreps_out, instructions, flat_w, flat_b)
    din, dout = W_big.shape

    w_itemsize = jnp.dtype(compute_dtype).itemsize
    sub_mult = 16 if w_itemsize == 2 else 8
    budget = _vmem_budget_bytes()

    din_r, dout_r = _round_up(din, 128), _round_up(dout, 128)
    # W-resident footprint at the smallest batch tile: W (single-fetch, worst case 2
    # buffers) + double-buffered x/out tiles + f32 matmul result + bias.
    resident_min = (2 * din_r * dout_r * w_itemsize
                    + 2 * sub_mult * din_r * w_itemsize
                    + 3 * sub_mult * dout_r * 4
                    + 2 * dout_r * 4)
    resident = resident_min <= budget

    if resident:
        din_p, dout_p = din_r, dout_r
        tk, tn = din_p, dout_p
    else:
        tn = _pick_tile(dout, tn_cap)
        tk = _pick_tile(din, tk_cap)
        din_p = _round_up(din, tk)     # pad up to the tile, don't shrink the tile
        dout_p = _round_up(dout, tn)

    Wp = jnp.pad(W_big, ((0, din_p - din), (0, dout_p - dout))).astype(compute_dtype)
    bp = jnp.pad(b_big, (0, dout_p - dout)).reshape(1, dout_p).astype(jnp.float32)
    return LinearParams(Wp, bp, din, dout, din_p, dout_p, tk, tn, resident)


# ----------------------------------------------------------------------------- #
# Pallas kernels
# ----------------------------------------------------------------------------- #
def _linear_resident_kernel(x_ref, w_ref, b_ref, o_ref):
    # Whole W and bias stay VMEM-resident (constant index map); 1-D grid over batch.
    acc = jnp.dot(x_ref[...], w_ref[...], preferred_element_type=jnp.float32)
    o_ref[...] = (acc + b_ref[...]).astype(o_ref.dtype)


def _linear_tiled_kernel(x_ref, w_ref, b_ref, o_ref, acc_ref):
    # 3-D (batch, N, K) grid, K innermost; bias folded into the k==0 accumulator init.
    @pl.when(pl.program_id(2) == 0)
    def _():
        acc_ref[...] = jnp.broadcast_to(b_ref[...], acc_ref.shape)

    acc_ref[...] += jnp.dot(x_ref[...], w_ref[...],
                            preferred_element_type=jnp.float32)

    @pl.when(pl.program_id(2) == pl.num_programs(2) - 1)
    def _():
        o_ref[...] = acc_ref[...].astype(o_ref.dtype)


# ----------------------------------------------------------------------------- #
# Wrapper
# ----------------------------------------------------------------------------- #
def pallas_linear(x, params: LinearParams, *, tb_cap=1024):
    B, din = x.shape
    assert din == params.din
    Wp, bp = params.Wp, params.bp
    din_p, dout_p, tk, tn = params.din_p, params.dout_p, params.tk, params.tn
    compute_dtype = Wp.dtype
    w_itemsize = jnp.dtype(compute_dtype).itemsize
    out_itemsize = jnp.dtype(x.dtype).itemsize
    sub_mult = 16 if w_itemsize == 2 else 8
    budget = _vmem_budget_bytes()

    # ---- batch tiling (balanced; bounded padding waste) -------------------- #
    tb = _balanced_tb(B, tb_cap, sub_mult)
    if params.resident:
        # shrink tb until the W-resident footprint fits the budget
        def fits(t):
            return (2 * din_p * dout_p * w_itemsize
                    + 2 * t * din_p * w_itemsize
                    + 2 * t * dout_p * out_itemsize
                    + t * dout_p * 4
                    + 2 * dout_p * 4) <= budget
        while tb > sub_mult and not fits(tb):
            tb = max(sub_mult, _round_up(tb // 2, sub_mult))

    # ---- >= 2 grid steps on a parallel axis when possible (v7x megacore) --- #
    single_parallel = (_round_up(B, tb) // tb == 1) and (params.resident or dout_p // tn == 1)
    if single_parallel and B > sub_mult:
        tb = min(tb, _round_up(_cdiv(B, 2), sub_mult))

    B_p = _round_up(B, tb)
    xp = jnp.pad(x, ((0, B_p - B), (0, din_p - din))).astype(compute_dtype)

    cost = pl.CostEstimate(
        flops=2 * B_p * din_p * dout_p,
        transcendentals=0,
        bytes_accessed=(B_p * din_p * w_itemsize + din_p * dout_p * w_itemsize
                        + dout_p * 4 + B_p * dout_p * out_itemsize),
    )

    if params.resident:
        vmem_est = (2 * din_p * dout_p * w_itemsize + 2 * tb * din_p * w_itemsize
                    + 2 * tb * dout_p * out_itemsize + tb * dout_p * 4 + 2 * dout_p * 4)
        grid = (B_p // tb,)
        out_p = pl.pallas_call(
            _linear_resident_kernel,
            out_shape=jax.ShapeDtypeStruct((B_p, dout_p), x.dtype),
            grid_spec=pltpu.PrefetchScalarGridSpec(
                num_scalar_prefetch=0,
                grid=grid,
                in_specs=[
                    pl.BlockSpec((tb, din_p), lambda i: (i, 0)),
                    pl.BlockSpec((din_p, dout_p), lambda i: (0, 0)),  # fetched once
                    pl.BlockSpec((1, dout_p), lambda i: (0, 0)),      # fetched once
                ],
                out_specs=pl.BlockSpec((tb, dout_p), lambda i: (i, 0)),
            ),
            compiler_params=pltpu.CompilerParams(
                dimension_semantics=("parallel",),
                vmem_limit_bytes=int(min(budget, max(2 * vmem_est, 16 << 20))),
            ),
            cost_estimate=cost,
        )(xp, Wp, bp)
    else:
        vmem_est = (2 * (tb * tk * w_itemsize + tk * tn * w_itemsize
                         + tb * tn * out_itemsize + tn * 4) + tb * tn * 4)
        grid = (B_p // tb, dout_p // tn, din_p // tk)
        out_p = pl.pallas_call(
            _linear_tiled_kernel,
            out_shape=jax.ShapeDtypeStruct((B_p, dout_p), x.dtype),
            grid_spec=pltpu.PrefetchScalarGridSpec(
                num_scalar_prefetch=0,
                grid=grid,
                in_specs=[
                    pl.BlockSpec((tb, tk), lambda i, j, k: (i, k)),
                    pl.BlockSpec((tk, tn), lambda i, j, k: (k, j)),
                    pl.BlockSpec((1, tn), lambda i, j, k: (0, j)),
                ],
                out_specs=pl.BlockSpec((tb, tn), lambda i, j, k: (i, j)),
                scratch_shapes=[pltpu.VMEM((tb, tn), jnp.float32)],
            ),
            compiler_params=pltpu.CompilerParams(
                dimension_semantics=("parallel", "parallel", "arbitrary"),
                vmem_limit_bytes=int(min(budget, max(2 * vmem_est, 16 << 20))),
            ),
            cost_estimate=cost,
        )(xp, Wp, bp)

    return out_p[:B, :params.dout]


# ----------------------------------------------------------------------------- #
# Pure-JAX reference implementing the e3nn codegen semantics instruction-by-
# instruction (used to validate the kernel).
# ----------------------------------------------------------------------------- #
def reference_linear(x, flat_w, flat_b, irreps_in, irreps_out, instructions):
    B = x.shape[0]
    in_off = irreps_offsets(irreps_in)
    parts = {i: [] for i in range(len(irreps_out))}
    wi = bi = 0
    for ins in instructions:
        mul_out, d_out = irreps_out[ins.i_out]
        if ins.i_in == -1:
            n = mul_out * d_out
            part = (ins.path_weight * flat_b[bi:bi + n]).reshape(1, n)
            bi += n
            parts[ins.i_out].append(jnp.broadcast_to(part, (B, n)))
        else:
            mul_in, d_in = irreps_in[ins.i_in]
            n = mul_in * mul_out
            w = flat_w[wi:wi + n].reshape(mul_in, mul_out)
            wi += n
            xb = x[:, in_off[ins.i_in]:in_off[ins.i_in] + mul_in * d_in]
            xb = xb.reshape(B, mul_in, d_in)
            eo = ins.path_weight * jnp.einsum('uw,zui->zwi', w, xb)
            parts[ins.i_out].append(eo.reshape(B, mul_out * d_out))
    outs = []
    for i_out, (mul, d) in enumerate(irreps_out):
        if mul == 0:
            continue
        ps = parts[i_out]
        if ps:
            s = ps[0]
            for p in ps[1:]:
                s = s + p
        else:
            s = jnp.zeros((B, mul * d), x.dtype)
        outs.append(s)
    return jnp.concatenate(outs, axis=-1) if len(outs) > 1 else outs[0]


if __name__ == "__main__":
    # Example module config: Linear("4x0e + 4x1o" -> "8x0e + 8x1o", biases=True)
    irreps_in = [(4, 1), (4, 3)]    # 4x0e + 4x1o  -> dim 16
    irreps_out = [(8, 1), (8, 3)]   # 8x0e + 8x1o  -> dim 32
    biases = [True, False]          # biases=True: only scalar (0e) irreps get a bias

    instructions = build_instructions(irreps_in, irreps_out, biases)
    weight_numel, bias_numel = count_params(irreps_in, irreps_out, instructions)

    key = jax.random.PRNGKey(0)
    kw, kb, kx = jax.random.split(key, 3)
    # torch init: weight ~ randn(weight_numel); bias inits to zeros, but the forward
    # accepts arbitrary bias, so use a deterministic nonzero one to exercise the path.
    flat_w = jax.random.normal(kw, (weight_numel,), dtype=jnp.float32)
    flat_b = jax.random.normal(kb, (bias_numel,), dtype=jnp.float32)

    B = 16
    x = jax.random.normal(kx, (B, irreps_dim(irreps_in)), dtype=jnp.float32)

    # one-time parameter expansion + padding + bf16 cast (hoisted out of forward)
    params = prepare_linear_params(irreps_in, irreps_out, instructions, flat_w, flat_b)

    out = pallas_linear(x, params)
    out = jax.block_until_ready(out)

    ref = reference_linear(x, flat_w, flat_b, irreps_in, irreps_out, instructions)
    assert out.shape == (B, irreps_dim(irreps_out))
    # bf16 operands (f32 accumulation) -> loosened tolerance
    assert jnp.allclose(out, ref, rtol=2e-2, atol=2e-2), "mismatch vs reference"

    print("KERNEL_OK")
</pallas_src>

<mosaic_0001>
module attributes {stable_mosaic.version = 11 : i64} {
  func.func @_linear_resident_kernel(%arg0: i32, %arg1: memref<16x128xbf16, #tpu.memory_space<vmem>>, %arg2: memref<128x128xbf16, #tpu.memory_space<vmem>>, %arg3: memref<1x128xf32, #tpu.memory_space<vmem>>, %arg4: memref<16x128xf32, #tpu.memory_space<vmem>>) attributes {dimension_semantics = [#tpu.dimension_semantics<parallel>], iteration_bounds = array<i64: 1>, scalar_prefetch = 0 : i64, scratch_operands = 0 : i64, tpu.core_type = #tpu.core_type<tc>, window_params = [{transform_indices = @transform_0, window_bounds = array<i64: 16, 128>}, {pipeline_mode = #tpu.pipeline_mode<synchronous>, transform_indices = @transform_1, window_bounds = array<i64: 128, 128>}, {pipeline_mode = #tpu.pipeline_mode<synchronous>, transform_indices = @transform_2, window_bounds = array<i64: 1, 128>}, {transform_indices = @transform_3, window_bounds = array<i64: 16, 128>}]} {
    %c0 = arith.constant 0 : index
    %c0_0 = arith.constant 0 : index
    %0 = vector.load %arg1[%c0, %c0_0] : memref<16x128xbf16, #tpu.memory_space<vmem>>, vector<16x128xbf16>
    %c0_1 = arith.constant 0 : index
    %c0_2 = arith.constant 0 : index
    %1 = vector.load %arg2[%c0_1, %c0_2] : memref<128x128xbf16, #tpu.memory_space<vmem>>, vector<128x128xbf16>
    %cst = arith.constant dense<0.000000e+00> : vector<16x128xf32>
    %2 = tpu.matmul %0, %1, %cst {dimension_numbers = #tpu.dot_dimension_numbers<[1], [0], [0], [1], [0, 0, 1, 1], [], []>} : vector<16x128xbf16>, vector<128x128xbf16>, vector<16x128xf32> -> vector<16x128xf32>
    %c0_3 = arith.constant 0 : index
    %c0_4 = arith.constant 0 : index
    %3 = vector.load %arg3[%c0_3, %c0_4] : memref<1x128xf32, #tpu.memory_space<vmem>>, vector<1x128xf32>
    %4 = vector.broadcast %3 : vector<1x128xf32> to vector<16x128xf32>
    %5 = arith.addf %2, %4 : vector<16x128xf32>
    %c0_5 = arith.constant 0 : index
    %c0_6 = arith.constant 0 : index
    %6 = vector.load %arg4[%c0_5, %c0_6] : memref<16x128xf32, #tpu.memory_space<vmem>>, vector<16x128xf32>
    tpu.vector_store %arg4[%c0_5, %c0_6], %5 {strides = array<i32>} : memref<16x128xf32, #tpu.memory_space<vmem>>, vector<16x128xf32>,
    return
  }
  func.func @transform_0(%arg0: i32) -> (i32, i32) {
    %c0_i32 = arith.constant 0 : i32
    %c0_i32_0 = arith.constant 0 : i32
    return %arg0, %c0_i32 : i32, i32
  }
  func.func @transform_1(%arg0: i32) -> (i32, i32) {
    %c0_i32 = arith.constant 0 : i32
    %c0_i32_0 = arith.constant 0 : i32
    %c0_i32_1 = arith.constant 0 : i32
    return %c0_i32, %c0_i32_0 : i32, i32
  }
  func.func @transform_2(%arg0: i32) -> (i32, i32) {
    %c0_i32 = arith.constant 0 : i32
    %c0_i32_0 = arith.constant 0 : i32
    %c0_i32_1 = arith.constant 0 : i32
    return %c0_i32, %c0_i32_0 : i32, i32
  }
  func.func @transform_3(%arg0: i32) -> (i32, i32) {
    %c0_i32 = arith.constant 0 : i32
    %c0_i32_0 = arith.constant 0 : i32
    return %arg0, %c0_i32 : i32, i32
  }
}

</mosaic_0001>

<bundles_post_ra>
// kernel: tpu_custom_call.1
= control target key start
LH: loop header
LB: loop body
LE: loop exit
PB: predicated region body
PF: predicated region fallthrough
CT: control target
= control target key end

     0   :  { %8 = vsyncpa [#allocation3], 0  ;;  %s329_s0 = inlined_call_operand.hbm [shape: bf16[16,128], index: 0, kind: input, shape index: {}]   ;;  %s330_s1 = inlined_call_operand.hbm [shape: bf16[128,128], index: 1, kind: input, shape index: {}]   ;;  %s331_s2 = inlined_call_operand.vmem [shape: f32[1,128], index: 2, kind: input, shape index: {}]   ;;  %s332_s3 = inlined_call_operand.hbm [shape: f32[16,128], index: 3, kind: output, shape index: {}]  }
   0x1   :  { %9 = vsyncpa [#allocation6], 0 }
   0x2   :  { %10 = vsyncpa [#allocation4], 0  ;;  %s15_s14 = sshll.u32 %s329_s0, 4  ;;  %s290_s15 = smov [#allocation2]   ;;  %s16_s14 = int_to_ptr.hbm [resolvable:$true] %s15_s14 }
   0x3   :  { %s17_s16 = sshll.u32 %s290_s15, 4  ;;  %s28_s19 = sshll.u32 %s330_s1, 4  ;;  %s18_s16 = int_to_ptr.vmem [resolvable:$true] %s17_s16  ;;  %s29_s19 = int_to_ptr.hbm [resolvable:$true] %s28_s19 }
   0x4   :  { %s291_s20 = smov 64   ;;  %s292_s21 = smov 4  }
   0x5   :  { %23 = dma.hbm_to_vmem [thread:$0]  %s16_s14, 128, %s18_s16, [#allocation3], %s291_s20, %s291_s20, %s292_s21  }
   0x6   :  { %s293_s22 = smov [#allocation5]  }
   0x7   :  { %s30_s23 = sshll.u32 %s293_s22, 4  ;;  %s31_s23 = int_to_ptr.vmem [resolvable:$true] %s30_s23 }
   0x8   :  { %36 = dma.hbm_to_vmem [thread:$0]  %s29_s19, 1024, %s31_s23, [#allocation6], %s291_s20, %s291_s20, %s292_s21  }
   0x9   :  { %284 = dma.done.wait [#allocation3], 128  }
   0xa   :  { %285 = vsyncadd [#allocation3], 4294967168 }
   0xb   :  { %286 = dma.done.wait [#allocation6], 1024  }
   0xc   :  { %287 = vsyncadd [#allocation6], 4294966272  ;;  %v203_v0 = vld [vmem:[#allocation5 + $0x38] sm:$0xff]  ;;  %v202_v1 = vld [vmem:[#allocation5 + $0x30] sm:$0xff]  ;;  %s294_s24 = smov [#allocation7]   ;;  %s145_s28 = sshll.u32 %s332_s3, 4  ;;  %s146_s28 = int_to_ptr.hbm [resolvable:$true] %s145_s28 }
   0xd   :  { %123 = vmatpush.bf16.msra.mxu0 %v203_v0  ;;  %v201_v2 = vld [vmem:[#allocation5 + $0x28] sm:$0xff]  ;;  %v200_v3 = vld [vmem:[#allocation5 + $0x20] sm:$0xff]  ;;  %v199_v4 = vld [vmem:[#allocation5 + $0x18] sm:$0xff]  ;;  %s143_s25 = sshll.u32 %s294_s24, 4  ;;  %s295_s29 = smov 128   ;;  %s144_s25 = int_to_ptr.vmem [resolvable:$true] %s143_s25 }
   0xe   :  { %v198_v5 = vld [vmem:[#allocation5 + $0x10] sm:$0xff]  ;;  %v197_v6 = vld [vmem:[#allocation5 + $0x8] sm:$0xff]  ;;  %v196_v7 = vld [vmem:[#allocation5] sm:$0xff]  ;;  %s296_s30 = smov 8  }
   0xf   :  { %v195_v8 = vld [vmem:[#allocation2] sm:$0xff] }
  0x10   :  { %v211_v9 = vld [vmem:[%s331_s2] ss:$0 sm:$0xff] }
  0x11   :  { %124 = vmatpush.bf16.msra.mxu0 %v202_v1 }
  0x15   :  { %125 = vmatpush.bf16.msra.mxu0 %v201_v2 }
  0x19   :  { %126 = vmatpush.bf16.msra.mxu0 %v200_v3 }
  0x1d   :  { %127 = vmatpush.bf16.msra.mxu0 %v199_v4 }
  0x21   :  { %128 = vmatpush.bf16.msra.mxu0 %v198_v5 }
  0x25   :  { %129 = vmatpush.bf16.msra.mxu0 %v197_v6 }
  0x29   :  { %130 = vmatpush.bf16.msra.mxu0 %v196_v7 }
  0x2c   :  { %131 = vmatmul.bf16.vlgmr.msra.gmra.mxu0 %v195_v8 }
  0xa9   :  { %v132_v10 = vpop.f32.mrf.mxu0 }
  0xaa   :  { %v133_v11 = vadd.f32 %v211_v9, %v132_v10 }
  0xac   :  { %137 = vst [vmem:[#allocation7] sm:$0xff] %v133_v11 }
  0xb1   :  { %v134_v12 = vpop.f32.mrf.mxu0 }
  0xb2   :  { %v135_v13 = vadd.f32 %v211_v9, %v134_v12 }
  0xb4   :  { %138 = vst [vmem:[#allocation7 + $0x8] sm:$0xff] %v135_v13 }
  0xb5   :  { %151 = dma.vmem_to_hbm [thread:$0]  %s144_s25, 256, %s146_s28, [#allocation4], %s295_s29, %s295_s29, %s296_s30  }
  0xb6   :  { %288 = dma.done.wait [#allocation4], 256  }
  0xb7   :  { %289 = vsyncadd [#allocation4], 4294967040 }
  0xb8   :  { %156 = vsyncpa [#allocation3], 1 }
  0xb9   :  { %157 = vsyncpa [#allocation6], 1 }
  0xba   :  { %158 = vsyncpa [#allocation4], 1 }

</bundles_post_ra>
